<compile_context>
chip_gen: v7x
topology: tpu7x:2x2x1
jax: 0.10.0
libtpu: 0.0.40
codegen_flags: <defaults>
</compile_context>

<pallas_src>
import functools

import jax
import jax.numpy as jnp
from jax.experimental import pallas as pl
from jax.experimental.pallas import tpu as pltpu


def _log_stft_mag_loss_kernel(x_ref, y_ref, o_ref, *, tile_rows, valid_rows,
                              mask_tail):
    # x_ref / y_ref: (tile_rows, W) lane-dense tile of the flattened magnitudes.
    # o_ref:         (1, 1, W) per-block partial-sum output.
    x = x_ref[...].astype(jnp.float32)
    y = y_ref[...].astype(jnp.float32)
    # |log(y) - log(x)| == |log(y / x)|: one log + one exact divide per element
    # (EUP can become the binding slot at v7x HBM bandwidth).
    d = jnp.abs(jnp.log(y / x))
    if mask_tail:
        # Ragged tail rows of the last block: use a select (NOT multiply) so
        # NaN/inf from log of out-of-bounds garbage cannot leak into the sum.
        row = pl.program_id(0) * tile_rows + jax.lax.broadcasted_iota(
            jnp.int32, d.shape, 0)
        d = jnp.where(row < valid_rows, d, 0.0)
    # Reduce only over rows (VPU adds); the cheap cross-lane / cross-block
    # reduction happens once, outside the kernel.
    o_ref[0] = jnp.sum(d, axis=0, keepdims=True)


def _pick_fold(rows, n_freq, min_lanes=512, max_fold=1024):
    """Smallest k dividing `rows` with k*n_freq >= min_lanes (zero-copy reshape)."""
    if n_freq >= min_lanes:
        return 1
    k_min = -(-min_lanes // n_freq)  # ceil
    for k in range(k_min, min(rows, max_fold) + 1):
        if rows % k == 0:
            return k
    # No suitable divisor above the target: largest divisor below it.
    for k in range(min(k_min, rows), 0, -1):
        if rows % k == 0:
            return k
    return 1


def _pick_tile_rows(n_rows, lane_w, itemsize, target_bytes=2 << 20):
    """Rows per tile: ~target_bytes of input per tile, multiple of 16."""
    rows = target_bytes // (lane_w * itemsize)
    rows = max(16, (int(rows) // 16) * 16)
    if rows >= n_rows:
        return n_rows  # single full-height block (block dim == array dim)
    return rows


def log_stft_magnitude_loss(x_mag, y_mag, *, tile_rows=None):
    """Scalar L1 loss between log(y_mag) and log(x_mag), computed in Pallas."""
    assert x_mag.shape == y_mag.shape
    n_elems = 1
    for s in x_mag.shape:
        n_elems *= int(s)
    n_freq = int(x_mag.shape[-1])
    rows = n_elems // n_freq

    # Lane-dense, zero-copy re-view: fold k rows into the lane axis.
    k = _pick_fold(rows, n_freq)
    rows2, lane_w = rows // k, k * n_freq
    x2 = x_mag.reshape(rows2, lane_w)
    y2 = y_mag.reshape(rows2, lane_w)

    if tile_rows is None:
        itemsize = jnp.dtype(x_mag.dtype).itemsize
        tile_rows = _pick_tile_rows(rows2, lane_w, itemsize)
    tile_rows = min(int(tile_rows), rows2)

    num_blocks = pl.cdiv(rows2, tile_rows)
    # v7x megacore: prefer an even block count (>= 2) so both TensorCores get a
    # balanced share of the parallel grid axis.
    if num_blocks > 1 and num_blocks % 2 == 1:
        tr = ((-(-rows2 // (num_blocks + 1)) + 15) // 16) * 16
        if 0 < tr < tile_rows:
            tile_rows = tr
            num_blocks = pl.cdiv(rows2, tile_rows)

    kernel = functools.partial(
        _log_stft_mag_loss_kernel,
        tile_rows=tile_rows,
        valid_rows=rows2,
        mask_tail=(rows2 % tile_rows != 0),
    )

    in_spec = pl.BlockSpec((tile_rows, lane_w), lambda i: (i, 0))
    out_spec = pl.BlockSpec((1, 1, lane_w), lambda i: (i, 0, 0))

    partials = pl.pallas_call(
        kernel,
        out_shape=jax.ShapeDtypeStruct((num_blocks, 1, lane_w), jnp.float32),
        grid_spec=pl.GridSpec(
            grid=(num_blocks,),
            in_specs=[in_spec, in_spec],
            out_specs=out_spec,
        ),
        compiler_params=pltpu.CompilerParams(
            dimension_semantics=("parallel",),
        ),
    )(x2, y2)

    # Final tiny cross-lane / cross-block reduction + mean in plain JAX.
    return jnp.sum(partials) / n_elems


if __name__ == "__main__":
    key = jax.random.PRNGKey(0)
    kx, ky = jax.random.split(key)

    # (B, #frames, #freq_bins) — small, realistic STFT-like shapes; frame count
    # deliberately not tile-aligned to exercise the fold / masking logic.
    B, T, F = 2, 30, 65
    x_mag = jax.random.uniform(kx, (B, T, F), jnp.float32, minval=0.1, maxval=4.0)
    y_mag = jax.random.uniform(ky, (B, T, F), jnp.float32, minval=0.1, maxval=4.0)

    loss = jax.block_until_ready(log_stft_magnitude_loss(x_mag, y_mag))

    # sanity check against plain-JAX reference (== F.l1_loss(log y, log x))
    ref = jnp.mean(jnp.abs(jnp.log(y_mag) - jnp.log(x_mag)))
    assert jnp.allclose(loss, ref, rtol=1e-5, atol=1e-6), (loss, ref)

    print("KERNEL_OK")
</pallas_src>

<mosaic_0001>
module attributes {stable_mosaic.version = 11 : i64} {
  func.func @_log_stft_mag_loss_kernel(%arg0: i32, %arg1: memref<6x650xf32, #tpu.memory_space<vmem>>, %arg2: memref<6x650xf32, #tpu.memory_space<vmem>>, %arg3: memref<1x1x650xf32, #tpu.memory_space<vmem>>) attributes {dimension_semantics = [#tpu.dimension_semantics<parallel>], iteration_bounds = array<i64: 1>, scalar_prefetch = 0 : i64, scratch_operands = 0 : i64, tpu.core_type = #tpu.core_type<tc>, window_params = [{transform_indices = @transform_0, window_bounds = array<i64: 6, 650>}, {transform_indices = @transform_1, window_bounds = array<i64: 6, 650>}, {transform_indices = @transform_2, window_bounds = array<i64: 1, 1, 650>}]} {
    %c0 = arith.constant 0 : index
    %c0_0 = arith.constant 0 : index
    %0 = vector.load %arg1[%c0, %c0_0] : memref<6x650xf32, #tpu.memory_space<vmem>>, vector<6x650xf32>
    %c0_1 = arith.constant 0 : index
    %c0_2 = arith.constant 0 : index
    %1 = vector.load %arg2[%c0_1, %c0_2] : memref<6x650xf32, #tpu.memory_space<vmem>>, vector<6x650xf32>
    %2 = arith.divf %1, %0 : vector<6x650xf32>
    %3 = math.log %2 : vector<6x650xf32>
    %4 = math.absf %3 : vector<6x650xf32>
    %cst = arith.constant dense<0.000000e+00> : vector<650xf32>
    %5 = vector.multi_reduction <add>, %4, %cst [0] : vector<6x650xf32> to vector<650xf32>
    %6 = vector.shape_cast %5 : vector<650xf32> to vector<1x650xf32>
    %c0_3 = arith.constant 0 : index
    %c0_4 = arith.constant 0 : index
    %c0_5 = arith.constant 0 : index
    %7 = vector.load %arg3[%c0_3, %c0_4, %c0_5] : memref<1x1x650xf32, #tpu.memory_space<vmem>>, vector<1x1x650xf32>
    %8 = vector.shape_cast %7 : vector<1x1x650xf32> to vector<1x650xf32>
    %9 = vector.shape_cast %6 : vector<1x650xf32> to vector<1x1x650xf32>
    tpu.vector_store %arg3[%c0_3, %c0_4, %c0_5], %9 {strides = array<i32>} : memref<1x1x650xf32, #tpu.memory_space<vmem>>, vector<1x1x650xf32>,
    return
  }
  func.func @transform_0(%arg0: i32) -> (i32, i32) {
    %c0_i32 = arith.constant 0 : i32
    %c0_i32_0 = arith.constant 0 : i32
    return %arg0, %c0_i32 : i32, i32
  }
  func.func @transform_1(%arg0: i32) -> (i32, i32) {
    %c0_i32 = arith.constant 0 : i32
    %c0_i32_0 = arith.constant 0 : i32
    return %arg0, %c0_i32 : i32, i32
  }
  func.func @transform_2(%arg0: i32) -> (i32, i32, i32) {
    %c0_i32 = arith.constant 0 : i32
    %c0_i32_0 = arith.constant 0 : i32
    %c0_i32_1 = arith.constant 0 : i32
    return %arg0, %c0_i32, %c0_i32_0 : i32, i32, i32
  }
}

</mosaic_0001>

<bundles_post_ra>
// kernel: tpu_custom_call.1
= control target key start
LH: loop header
LB: loop body
LE: loop exit
PB: predicated region body
PF: predicated region fallthrough
CT: control target
= control target key end

     0   :  { %7 = vsyncpa [#allocation3], 0  ;;  %s351_s0 = inlined_call_operand.hbm [shape: f32[6,650], index: 0, kind: input, shape index: {}]   ;;  %s352_s1 = inlined_call_operand.hbm [shape: f32[6,650], index: 1, kind: input, shape index: {}]   ;;  %s353_s2 = inlined_call_operand.hbm [shape: f32[1,1,650], index: 2, kind: output, shape index: {}]  }
   0x1   :  { %8 = vsyncpa [#allocation6], 0 }
   0x2   :  { %9 = vsyncpa [#allocation4], 0  ;;  %s290_s9 = smov [#allocation2]   ;;  %s291_s11 = smov [#allocation5]  }
   0x3   :  { %s16_s10 = sshll.u32 %s290_s9, 4  ;;  %s26_s12 = sshll.u32 %s291_s11, 4  ;;  %s17_s10 = int_to_ptr.vmem [resolvable:$true] %s16_s10  ;;  %s27_s12 = int_to_ptr.vmem [resolvable:$true] %s26_s12 }
   0x4   :  { %s218_s15 = scalar_lea.hbm %s351_s0, 768 }
   0x5   :  { %p219_p0 = scmp.ne.s32.totalorder %s351_s0, %s218_s15  ;;  %p222_p1 = scmp.lt.u32.totalorder %s218_s15, %s351_s0 }
   0x7   :  { %p224_p2 = pnand %p222_p1, %p219_p0 }
   0x9   :  { %227 = shalt.err (!%p224_p2)
}
   0xa   :  { %s228_s20 = scalar_lea.vmem %s17_s10, 768  ;;  %p233_p4 = scmp.lt.s32.totalorder %s17_s10, %s17_s10 }
   0xb   :  { %p229_p3 = scmp.ne.s32.totalorder %s17_s10, %s228_s20  ;;  %p234_p5 = scmp.lt.s32.totalorder %s228_s20, %s228_s20 }
   0xd   :  { %p235_p6 = por %p234_p5, %p233_p4 }
   0xf   :  { %p236_p7 = pnand %p235_p6, %p229_p3 }
  0x11   :  { %239 = shalt.err (!%p236_p7)
}
  0x12   :  { %19 = dma.hbm_to_vmem [thread:$0]  %s351_s0, 768, %s17_s10, [#allocation3]  }
  0x13   :  { %s240_s25 = scalar_lea.hbm %s352_s1, 768 }
  0x14   :  { %p241_p8 = scmp.ne.s32.totalorder %s352_s1, %s240_s25  ;;  %p244_p9 = scmp.lt.u32.totalorder %s240_s25, %s352_s1 }
  0x16   :  { %p246_p10 = pnand %p244_p9, %p241_p8 }
  0x18   :  { %249 = shalt.err (!%p246_p10)
}
  0x19   :  { %s250_s30 = scalar_lea.vmem %s27_s12, 768  ;;  %p255_p12 = scmp.lt.s32.totalorder %s27_s12, %s27_s12 }
  0x1a   :  { %p251_p11 = scmp.ne.s32.totalorder %s27_s12, %s250_s30  ;;  %p256_p13 = scmp.lt.s32.totalorder %s250_s30, %s250_s30 }
  0x1c   :  { %p257_p0 = por %p256_p13, %p255_p12 }
  0x1e   :  { %p258_p1 = pnand %p257_p0, %p251_p11 }
  0x20   :  { %261 = shalt.err (!%p258_p1)
}
  0x21   :  { %29 = dma.hbm_to_vmem [thread:$0]  %s352_s1, 768, %s27_s12, [#allocation6]  }
  0x22   :  { %284 = dma.done.wait [#allocation3], 768  }
  0x23   :  { %285 = vsyncadd [#allocation3], 4294966528 }
  0x24   :  { %286 = dma.done.wait [#allocation6], 768  }
  0x25   :  { %287 = vsyncadd [#allocation6], 4294966528  ;;  %v36_v0 = vld [vmem:[#allocation2] sm:$0x3f]  ;;  %v37_v1 = vld [vmem:[#allocation2 + $0x8] sm:$0x3f]  ;;  %v134_v46 = vlaneseq }
  0x26   :  { %v38_v2 = vld [vmem:[#allocation2 + $0x10] sm:$0x3f]  ;;  %v39_v3 = vld [vmem:[#allocation2 + $0x18] sm:$0x3f]  ;;  %194 = vrcp.f32 %v36_v0  ;;  %v40_v4 = vld [vmem:[#allocation2 + $0x20] sm:$0x3f] }
  0x27   :  { %196 = vrcp.f32 %v37_v1  ;;  %v41_v5 = vld [vmem:[#allocation2 + $0x28] sm:$0x3f]  ;;  %v42_v6 = vld [vmem:[#allocation5] sm:$0x3f]  ;;  %v43_v7 = vld [vmem:[#allocation5 + $0x8] sm:$0x3f] }
  0x28   :  { %198 = vrcp.f32 %v38_v2  ;;  %v44_v9 = vld [vmem:[#allocation5 + $0x10] sm:$0x3f]  ;;  %v45_v11 = vld [vmem:[#allocation5 + $0x18] sm:$0x3f]  ;;  %v46_v14 = vld [vmem:[#allocation5 + $0x20] sm:$0x3f] }
  0x29   :  { %200 = vrcp.f32 %v39_v3  ;;  %v47_v17 = vld [vmem:[#allocation5 + $0x28] sm:$0x3f]  ;;  %vm78_vm0 = vcmask 1045504   ;;  %vm114_vm1 = vcmask 78848   ;;  %v292_v54 = vmov 1966171168  }
  0x2a   :  { %202 = vrcp.f32 %v40_v4  ;;  %v132_v55 = vunpack.c.l.s4 %v292_v54  ;;  %v135_v2 = vshrl.u32 %v134_v46, 7  ;;  %s293_s1 = smov [#allocation7]   ;;  %vm171_vm2 = vcmp.lt.s32.totalorder %v134_v46, 650 }
  0x2b   :  { %204 = vrcp.f32 %v41_v5  ;;  %s180_s4 = sshll.u32 %s293_s1, 4  ;;  %s181_s4 = int_to_ptr.vmem [resolvable:$true] %s180_s4 }
  0x2c   :  { %s262_s5 = scalar_lea.vmem %s181_s4, 96  ;;  %p267_p3 = scmp.lt.s32.totalorder %s181_s4, %s181_s4 }
  0x2d   :  { %p263_p2 = scmp.ne.s32.totalorder %s181_s4, %s262_s5  ;;  %p268_p4 = scmp.lt.s32.totalorder %s262_s5, %s262_s5 }
  0x2f   :  { %p269_p5 = por %p268_p4, %p267_p3 }
  0x30   :  { %v195_v8 = vpop.eup %194 }
  0x31   :  { %v197_v10 = vpop.eup %196  ;;  %v49_v12 = vmul.f32 %v195_v8, %v42_v6  ;;  %v133_v6 = vunpack.c.0.s8 %v132_v55  ;;  %p270_p6 = pnand %p269_p5, %p263_p2 }
  0x32   :  { %v199_v13 = vpop.eup %198  ;;  %v51_v15 = vmul.f32 %v197_v10, %v43_v7 }
  0x33   :  { %v201_v16 = vpop.eup %200  ;;  %v53_v18 = vmul.f32 %v199_v13, %v44_v9  ;;  %206 = vlog2.f32 %v49_v12 }
  0x34   :  { %v203_v19 = vpop.eup %202  ;;  %v55_v20 = vmul.f32 %v201_v16, %v45_v11  ;;  %208 = vlog2.f32 %v51_v15 }
  0x35   :  { %v205_v21 = vpop.eup %204  ;;  %v57_v22 = vmul.f32 %v203_v19, %v46_v14  ;;  %210 = vlog2.f32 %v53_v18  ;;  %v136_v19 = vsub.s32 %v133_v6, %v135_v2 }
  0x36   :  { %v59_v23 = vmul.f32 %v205_v21, %v47_v17  ;;  %212 = vlog2.f32 %v55_v20 }
  0x37   :  { %214 = vlog2.f32 %v57_v22 }
  0x38   :  { %216 = vlog2.f32 %v59_v23 }
  0x3d   :  { %v207_v24 = vpop.eup %206 }
  0x3e   :  { %v209_v25 = vpop.eup %208  ;;  %v61_v26 = vmul.f32 0.6931472, %v207_v24 }
  0x3f   :  { %v211_v27 = vpop.eup %210  ;;  %v63_v28 = vmul.f32 0.6931472, %v209_v25 }
  0x40   :  { %v213_v29 = vpop.eup %212  ;;  %v65_v30 = vmul.f32 0.6931472, %v211_v27  ;;  %v72_v31 = vand.u32 2147483647, %v61_v26 }
  0x41   :  { %v215_v32 = vpop.eup %214  ;;  %v67_v33 = vmul.f32 0.6931472, %v213_v29  ;;  %v73_v34 = vand.u32 2147483647, %v63_v28 }
  0x42   :  { %v217_v35 = vpop.eup %216  ;;  %v69_v36 = vmul.f32 0.6931472, %v215_v32  ;;  %v74_v37 = vand.u32 2147483647, %v65_v30  ;;  %v79_v38 = vsel %vm78_vm0, %v72_v31, 0.0 }
  0x43   :  { %v71_v39 = vmul.f32 0.6931472, %v217_v35  ;;  %v75_v40 = vand.u32 2147483647, %v67_v33  ;;  %v80_v41 = vrot.slane %v79_v38, 4  ;;  %v86_v42 = vsel %vm78_vm0, %v73_v34, 0.0 }
  0x44   :  { %v76_v43 = vand.u32 2147483647, %v69_v36  ;;  %v87_v44 = vrot.slane %v86_v42, 4  ;;  %v93_v45 = vsel %vm78_vm0, %v74_v37, 0.0 }
  0x45   :  { %v77_v47 = vand.u32 2147483647, %v71_v39  ;;  %v81_v48 = vadd.f32 %v80_v41, %v79_v38  ;;  %v94_v49 = vrot.slane %v93_v45, 4  ;;  %v100_v50 = vsel %vm78_vm0, %v75_v40, 0.0 }
  0x46   :  { %v88_v51 = vadd.f32 %v87_v44, %v86_v42  ;;  %v101_v52 = vrot.slane %v100_v50, 4  ;;  %v107_v53 = vsel %vm78_vm0, %v76_v43, 0.0 }
  0x47   :  { %v82_v56 = vrot.slane %v81_v48, 2  ;;  %v95_v57 = vadd.f32 %v94_v49, %v93_v45  ;;  %v108_v58 = vrot.slane %v107_v53, 4  ;;  %v115_v59 = vsel %vm114_vm1, %v77_v47, 0.0 }
  0x48   :  { %v89_v60 = vrot.slane %v88_v51, 2  ;;  %v102_v61 = vadd.f32 %v101_v52, %v100_v50  ;;  %v116_v62 = vrot.slane %v115_v59, 4 }
  0x49   :  { %v83_v63 = vadd.f32 %v82_v56, %v81_v48  ;;  %v96_v0 = vrot.slane %v95_v57, 2  ;;  %v109_v1 = vadd.f32 %v108_v58, %v107_v53 }
  0x4a   :  { %v90_v3 = vadd.f32 %v89_v60, %v88_v51  ;;  %v103_v4 = vrot.slane %v102_v61, 2  ;;  %v117_v5 = vadd.f32 %v116_v62, %v115_v59 }
  0x4b   :  { %v84_v7 = vrot.slane %v83_v63, 1  ;;  %v97_v8 = vadd.f32 %v96_v0, %v95_v57  ;;  %v110_v9 = vrot.slane %v109_v1, 2 }
  0x4c   :  { %v91_v10 = vrot.slane %v90_v3, 1  ;;  %v104_v11 = vadd.f32 %v103_v4, %v102_v61  ;;  %v118_v12 = vrot.slane %v117_v5, 2 }
  0x4d   :  { %v85_v13 = vadd.f32 %v84_v7, %v83_v63  ;;  %v98_v14 = vrot.slane %v97_v8, 1  ;;  %v111_v15 = vadd.f32 %v110_v9, %v109_v1 }
  0x4e   :  { %v92_v16 = vadd.f32 %v91_v10, %v90_v3  ;;  %v105_v17 = vrot.slane %v104_v11, 1  ;;  %v119_v18 = vadd.f32 %v118_v12, %v117_v5 }
  0x4f   :  { %v99_v20 = vadd.f32 %v98_v14, %v97_v8  ;;  %v112_v21 = vrot.slane %v111_v15, 1 }
  0x50   :  { %v106_v22 = vadd.f32 %v105_v17, %v104_v11  ;;  %v120_v23 = vrot.slane %v119_v18, 1  ;;  %v128_v24 = vcombine.low %v85_v13, %v92_v16 }
  0x51   :  { %v113_v25 = vadd.f32 %v112_v21, %v111_v15 }
  0x52   :  { %v121_v26 = vadd.f32 %v120_v23, %v119_v18  ;;  %v129_v27 = vcombine.low %v99_v20, %v106_v22  ;;  %v137_v28 = vrot.slane %v128_v24, %v136_v19 }
  0x54   :  { %v130_v29 = vcombine.low %v113_v25, %v121_v26  ;;  %v144_v30 = vrot.slane %v129_v27, %v136_v19 }
  0x56   :  { %v151_v31 = vrot.slane %v130_v29, %v136_v19  ;;  %v152_v32 = vcombine.low %v137_v28, %v144_v30 }
  0x58   :  { %v159_v33 = vrot.slane %v152_v32, %v136_v19  ;;  %v166_v34 = vrot.slane %v151_v31, %v136_v19 }
  0x5a   :  { %v167_v35 = vcombine.low %v159_v33, %v166_v34 }
  0x5c   :  { %173 = vst.msk [vmem:[#allocation7] sm:$0x3f] %vm171_vm2, %v167_v35 }
  0x5d   :  { %273 = shalt.err (!%p270_p6)
}
  0x5e   :  { %s274_s8 = scalar_lea.hbm %s353_s2, 96 }
  0x5f   :  { %p275_p7 = scmp.ne.s32.totalorder %s353_s2, %s274_s8  ;;  %p278_p8 = scmp.lt.u32.totalorder %s274_s8, %s353_s2 }
  0x61   :  { %p280_p9 = pnand %p278_p8, %p275_p7 }
  0x63   :  { %283 = shalt.err (!%p280_p9)
}
  0x64   :  { %183 = dma.vmem_to_hbm [thread:$0]  %s181_s4, 96, %s353_s2, [#allocation4]  }
  0x65   :  { %288 = dma.done.wait [#allocation4], 96  }
  0x66   :  { %289 = vsyncadd [#allocation4], 4294967200 }
  0x67   :  { %187 = vsyncpa [#allocation3], 1 }
  0x68   :  { %188 = vsyncpa [#allocation6], 1 }
  0x69   :  { %189 = vsyncpa [#allocation4], 1 }

</bundles_post_ra>
